<compile_context>
chip_gen: v7x
topology: tpu7x:2x2x1
jax: 0.10.0
libtpu: 0.0.40
codegen_flags: <defaults>
</compile_context>

<pallas_src>
import jax
import jax.numpy as jnp
from jax.experimental import pallas as pl
from jax.experimental.pallas import tpu as pltpu


def _multitask_kernel(users_ref, items_ref, ab_ref,
                      w1t_ref, b1_ref, w2_ref, b2_ref, out_ref):
    # Upcast bf16 inputs once; all elementwise / accumulation math in f32.
    users = users_ref[...].astype(jnp.float32)          # (D, TB)
    items = items_ref[...].astype(jnp.float32)          # (D, TB)
    ui = users * items                                   # (D, TB)  VPU elementwise

    # Factorization branch: p = <u, m> + a + b   (sublane reduce -> (1, TB), lane-dense)
    pred = jnp.sum(ui, axis=0, keepdims=True) + ab_ref[...]

    # Regression branch: one K=3D MXU pass on the stacked operand.
    x = jnp.concatenate([users, items, ui], axis=0)      # (3D, TB) sublane-contiguous
    h = jnp.dot(w1t_ref[...], x, preferred_element_type=jnp.float32) + b1_ref[...]
    h = jnp.maximum(h, 0.0)                               # ReLU, (H, TB)

    # N=1 output layer as a VPU multiply + sublane reduce (keeps the MXU free).
    score = jnp.sum(h * w2_ref[...], axis=0, keepdims=True) + b2_ref[...]

    # Single lane-dense (2, TB) store: row 0 = pred, row 1 = score.
    out_ref[...] = jnp.concatenate([pred, score], axis=0)


def multitask_forward_pallas(users_t, items_t, ab, w1_t, b1_t, w2, b2, *, tile_b=4096):
    d, batch = users_t.shape
    h = w1_t.shape[0]

    if batch <= tile_b:
        tb = batch
    else:
        assert tile_b % 128 == 0, "tile_b must be a multiple of 128 lanes"
        tb = tile_b
    n_tiles = pl.cdiv(batch, tb)   # partial final block; no jnp.pad pass needed

    def batch_spec(rows):
        return pl.BlockSpec((rows, tb), lambda i: (0, i))

    def resident(shape):
        return pl.BlockSpec(shape, lambda i: (0, 0))

    emb_bytes = users_t.dtype.itemsize
    flops = int(batch) * (2 * 3 * d * h + 4 * h + 3 * d)
    bytes_accessed = (int(batch) * (2 * d * emb_bytes + 4 + 8)
                      + 4 * (3 * d * h + 2 * h + 1))

    out = pl.pallas_call(
        _multitask_kernel,
        grid=(n_tiles,),
        out_shape=jax.ShapeDtypeStruct((2, batch), jnp.float32),
        in_specs=[
            batch_spec(d),              # users_t  (bf16)
            batch_spec(d),              # items_t  (bf16)
            batch_spec(1),              # ab       (f32)
            resident((h, 3 * d)),       # W1_t, resident in VMEM
            resident((h, 1)),           # b1_t
            resident((h, 1)),           # W2
            resident((1, 1)),           # b2
        ],
        out_specs=batch_spec(2),
        compiler_params=pltpu.CompilerParams(
            dimension_semantics=("parallel",),       # megacore sharding on v7x
            vmem_limit_bytes=32 * 1024 * 1024,       # safe on v7x's 64 MiB physical VMEM
        ),
        cost_estimate=pl.CostEstimate(
            flops=flops, transcendentals=0, bytes_accessed=bytes_accessed),
    )(users_t, items_t, ab, w1_t, b1_t, w2, b2)

    return out[0], out[1]


class MultiTaskNetPallas:
    """JAX/Pallas port of MultiTaskNet (embedding_sharing=True)."""

    def __init__(self, num_users, num_items, embedding_dim=32,
                 layer_sizes=(96, 64), key=None):
        assert layer_sizes[0] == 3 * embedding_dim
        if key is None:
            key = jax.random.PRNGKey(0)
        k_u, k_m, k_w1, k_bb1, k_w2, k_bb2 = jax.random.split(key, 6)
        d, hid = embedding_dim, layer_sizes[1]

        # ScaledEmbedding: normal(0, 1/embedding_dim); stored bf16 (HBM traffic), math f32.
        self.U = ((1.0 / d) * jax.random.normal(k_u, (num_users, d), jnp.float32)
                  ).astype(jnp.bfloat16)
        self.M = ((1.0 / d) * jax.random.normal(k_m, (num_items, d), jnp.float32)
                  ).astype(jnp.bfloat16)
        # ZeroEmbedding: zeros (tiny, keep f32).
        self.A = jnp.zeros((num_users, 1), jnp.float32)
        self.B = jnp.zeros((num_items, 1), jnp.float32)

        # MLP: Linear(3D -> hid), ReLU, Linear(hid -> 1); PyTorch default init.
        lim1 = 1.0 / jnp.sqrt(jnp.float32(3 * d))
        lim2 = 1.0 / jnp.sqrt(jnp.float32(hid))
        self.W1 = jax.random.uniform(k_w1, (3 * d, hid), jnp.float32, -lim1, lim1)
        self.b1 = jax.random.uniform(k_bb1, (1, hid), jnp.float32, -lim1, lim1)
        self.W2 = jax.random.uniform(k_w2, (hid, 1), jnp.float32, -lim2, lim2)
        self.b2 = jax.random.uniform(k_bb2, (1, 1), jnp.float32, -lim2, lim2)

        # Kernel-layout weight copies (tiny; built once, feature-major, single K=3D stack).
        self.W1_t = jnp.transpose(self.W1)   # (hid, 3d)
        self.b1_t = jnp.transpose(self.b1)   # (hid, 1)

    def __call__(self, user_ids, item_ids, tile_b=4096):
        # Embedding lookups (gather) + transpose to feature-major are XLA glue
        # (bf16 halves their HBM traffic); see TODO(synk) about in-kernel fusion.
        users_t = jnp.transpose(self.U[user_ids])                       # (D, B) bf16
        items_t = jnp.transpose(self.M[item_ids])                       # (D, B) bf16
        ab = (self.A[user_ids, 0] + self.B[item_ids, 0])[None, :]       # (1, B) f32
        pred, score = multitask_forward_pallas(
            users_t, items_t, ab, self.W1_t, self.b1_t, self.W2, self.b2,
            tile_b=tile_b)
        # torch.squeeze on (B, 1) -> (B,)
        return pred, score


def _reference_forward(net, user_ids, item_ids):
    # Uses the same (bf16-stored) parameters, computed in f32, matching the kernel path.
    users = net.U[user_ids].astype(jnp.float32)
    items = net.M[item_ids].astype(jnp.float32)
    ui = users * items
    pred = jnp.sum(ui, axis=1) + net.A[user_ids, 0] + net.B[item_ids, 0]
    x = jnp.concatenate([users, items, ui], axis=1)
    h = jnp.maximum(x @ net.W1 + net.b1, 0.0)
    score = (h @ net.W2 + net.b2)[:, 0]
    return pred, score


if __name__ == "__main__":
    key = jax.random.PRNGKey(0)
    k_params, k_u1, k_i1, k_u2, k_i2 = jax.random.split(key, 5)

    num_users, num_items, embedding_dim = 10, 12, 32
    net = MultiTaskNetPallas(num_users, num_items, embedding_dim=embedding_dim,
                             layer_sizes=(3 * embedding_dim, 64), key=k_params)

    # Case 1: small single-tile batch.
    batch = 8
    user_ids = jax.random.randint(k_u1, (batch,), 0, num_users, dtype=jnp.int32)
    item_ids = jax.random.randint(k_i1, (batch,), 0, num_items, dtype=jnp.int32)
    pred, score = net(user_ids, item_ids)
    pred = jax.block_until_ready(pred)
    score = jax.block_until_ready(score)
    pred_ref, score_ref = _reference_forward(net, user_ids, item_ids)
    assert pred.shape == (batch,) and score.shape == (batch,)
    assert jnp.allclose(pred, pred_ref, atol=1e-4, rtol=1e-4)
    assert jnp.allclose(score, score_ref, atol=1e-4, rtol=1e-4)

    # Case 2: multi-tile batch with a remainder (exercises the grid + partial-block path).
    batch2 = 200
    user_ids2 = jax.random.randint(k_u2, (batch2,), 0, num_users, dtype=jnp.int32)
    item_ids2 = jax.random.randint(k_i2, (batch2,), 0, num_items, dtype=jnp.int32)
    pred2, score2 = net(user_ids2, item_ids2, tile_b=128)
    pred2 = jax.block_until_ready(pred2)
    score2 = jax.block_until_ready(score2)
    pred2_ref, score2_ref = _reference_forward(net, user_ids2, item_ids2)
    assert pred2.shape == (batch2,) and score2.shape == (batch2,)
    assert jnp.allclose(pred2, pred2_ref, atol=1e-4, rtol=1e-4)
    assert jnp.allclose(score2, score2_ref, atol=1e-4, rtol=1e-4)

    print("KERNEL_OK")
</pallas_src>

<mosaic_0001>
module attributes {stable_mosaic.version = 11 : i64} {
  func.func @_multitask_kernel(%arg0: i32, %arg1: memref<32x8xbf16, #tpu.memory_space<vmem>>, %arg2: memref<32x8xbf16, #tpu.memory_space<vmem>>, %arg3: memref<1x8xf32, #tpu.memory_space<vmem>>, %arg4: memref<64x96xf32, #tpu.memory_space<vmem>>, %arg5: memref<64x1xf32, #tpu.memory_space<vmem>>, %arg6: memref<64x1xf32, #tpu.memory_space<vmem>>, %arg7: memref<1x1xf32, #tpu.memory_space<vmem>>, %arg8: memref<2x8xf32, #tpu.memory_space<vmem>>) attributes {dimension_semantics = [#tpu.dimension_semantics<parallel>], iteration_bounds = array<i64: 1>, scalar_prefetch = 0 : i64, scratch_operands = 0 : i64, tpu.core_type = #tpu.core_type<tc>, window_params = [{transform_indices = @transform_0, window_bounds = array<i64: 32, 8>}, {transform_indices = @transform_1, window_bounds = array<i64: 32, 8>}, {transform_indices = @transform_2, window_bounds = array<i64: 1, 8>}, {pipeline_mode = #tpu.pipeline_mode<synchronous>, transform_indices = @transform_3, window_bounds = array<i64: 64, 96>}, {pipeline_mode = #tpu.pipeline_mode<synchronous>, transform_indices = @transform_4, window_bounds = array<i64: 64, 1>}, {pipeline_mode = #tpu.pipeline_mode<synchronous>, transform_indices = @transform_5, window_bounds = array<i64: 64, 1>}, {pipeline_mode = #tpu.pipeline_mode<synchronous>, transform_indices = @transform_6, window_bounds = array<i64: 1, 1>}, {transform_indices = @transform_7, window_bounds = array<i64: 2, 8>}]} {
    %c0 = arith.constant 0 : index
    %c0_0 = arith.constant 0 : index
    %0 = vector.load %arg1[%c0, %c0_0] : memref<32x8xbf16, #tpu.memory_space<vmem>>, vector<32x8xbf16>
    %1 = arith.extf %0 : vector<32x8xbf16> to vector<32x8xf32>
    %c0_1 = arith.constant 0 : index
    %c0_2 = arith.constant 0 : index
    %2 = vector.load %arg2[%c0_1, %c0_2] : memref<32x8xbf16, #tpu.memory_space<vmem>>, vector<32x8xbf16>
    %3 = arith.extf %2 : vector<32x8xbf16> to vector<32x8xf32>
    %4 = arith.mulf %1, %3 : vector<32x8xf32>
    %cst = arith.constant dense<0.000000e+00> : vector<8xf32>
    %5 = vector.multi_reduction <add>, %4, %cst [0] : vector<32x8xf32> to vector<8xf32>
    %6 = vector.shape_cast %5 : vector<8xf32> to vector<1x8xf32>
    %c0_3 = arith.constant 0 : index
    %c0_4 = arith.constant 0 : index
    %7 = vector.load %arg3[%c0_3, %c0_4] : memref<1x8xf32, #tpu.memory_space<vmem>>, vector<1x8xf32>
    %8 = arith.addf %6, %7 : vector<1x8xf32>
    %9 = tpu.concatenate %1, %3, %4 in 0 : vector<32x8xf32>, vector<32x8xf32>, vector<32x8xf32> -> vector<96x8xf32>
    %c0_5 = arith.constant 0 : index
    %c0_6 = arith.constant 0 : index
    %10 = vector.load %arg4[%c0_5, %c0_6] : memref<64x96xf32, #tpu.memory_space<vmem>>, vector<64x96xf32>
    %cst_7 = arith.constant dense<0.000000e+00> : vector<64x8xf32>
    %11 = tpu.matmul %10, %9, %cst_7 {dimension_numbers = #tpu.dot_dimension_numbers<[1], [0], [0], [1], [0, 0, 1, 1], [], []>} : vector<64x96xf32>, vector<96x8xf32>, vector<64x8xf32> -> vector<64x8xf32>
    %c0_8 = arith.constant 0 : index
    %c0_9 = arith.constant 0 : index
    %12 = vector.load %arg5[%c0_8, %c0_9] : memref<64x1xf32, #tpu.memory_space<vmem>>, vector<64x1xf32>
    %13 = vector.broadcast %12 : vector<64x1xf32> to vector<64x8xf32>
    %14 = arith.addf %11, %13 : vector<64x8xf32>
    %cst_10 = arith.constant 0.000000e+00 : f32
    %15 = vector.broadcast %cst_10 : f32 to vector<64x8xf32>
    %16 = arith.maximumf %14, %15 : vector<64x8xf32>
    %c0_11 = arith.constant 0 : index
    %c0_12 = arith.constant 0 : index
    %17 = vector.load %arg6[%c0_11, %c0_12] : memref<64x1xf32, #tpu.memory_space<vmem>>, vector<64x1xf32>
    %18 = vector.broadcast %17 : vector<64x1xf32> to vector<64x8xf32>
    %19 = arith.mulf %16, %18 : vector<64x8xf32>
    %cst_13 = arith.constant dense<0.000000e+00> : vector<8xf32>
    %20 = vector.multi_reduction <add>, %19, %cst_13 [0] : vector<64x8xf32> to vector<8xf32>
    %21 = vector.shape_cast %20 : vector<8xf32> to vector<1x8xf32>
    %c0_14 = arith.constant 0 : index
    %c0_15 = arith.constant 0 : index
    %22 = vector.load %arg7[%c0_14, %c0_15] : memref<1x1xf32, #tpu.memory_space<vmem>>, vector<1x1xf32>
    %23 = vector.broadcast %22 : vector<1x1xf32> to vector<1x8xf32>
    %24 = arith.addf %21, %23 : vector<1x8xf32>
    %25 = tpu.concatenate %8, %24 in 0 : vector<1x8xf32>, vector<1x8xf32> -> vector<2x8xf32>
    %c0_16 = arith.constant 0 : index
    %c0_17 = arith.constant 0 : index
    %26 = vector.load %arg8[%c0_16, %c0_17] : memref<2x8xf32, #tpu.memory_space<vmem>>, vector<2x8xf32>
    tpu.vector_store %arg8[%c0_16, %c0_17], %25 {strides = array<i32>} : memref<2x8xf32, #tpu.memory_space<vmem>>, vector<2x8xf32>,
    return
  }
  func.func @transform_0(%arg0: i32) -> (i32, i32) {
    %c0_i32 = arith.constant 0 : i32
    %c0_i32_0 = arith.constant 0 : i32
    return %c0_i32, %arg0 : i32, i32
  }
  func.func @transform_1(%arg0: i32) -> (i32, i32) {
    %c0_i32 = arith.constant 0 : i32
    %c0_i32_0 = arith.constant 0 : i32
    return %c0_i32, %arg0 : i32, i32
  }
  func.func @transform_2(%arg0: i32) -> (i32, i32) {
    %c0_i32 = arith.constant 0 : i32
    %c0_i32_0 = arith.constant 0 : i32
    return %c0_i32, %arg0 : i32, i32
  }
  func.func @transform_3(%arg0: i32) -> (i32, i32) {
    %c0_i32 = arith.constant 0 : i32
    %c0_i32_0 = arith.constant 0 : i32
    %c0_i32_1 = arith.constant 0 : i32
    return %c0_i32, %c0_i32_0 : i32, i32
  }
  func.func @transform_4(%arg0: i32) -> (i32, i32) {
    %c0_i32 = arith.constant 0 : i32
    %c0_i32_0 = arith.constant 0 : i32
    %c0_i32_1 = arith.constant 0 : i32
    return %c0_i32, %c0_i32_0 : i32, i32
  }
  func.func @transform_5(%arg0: i32) -> (i32, i32) {
    %c0_i32 = arith.constant 0 : i32
    %c0_i32_0 = arith.constant 0 : i32
    %c0_i32_1 = arith.constant 0 : i32
    return %c0_i32, %c0_i32_0 : i32, i32
  }
  func.func @transform_6(%arg0: i32) -> (i32, i32) {
    %c0_i32 = arith.constant 0 : i32
    %c0_i32_0 = arith.constant 0 : i32
    %c0_i32_1 = arith.constant 0 : i32
    return %c0_i32, %c0_i32_0 : i32, i32
  }
  func.func @transform_7(%arg0: i32) -> (i32, i32) {
    %c0_i32 = arith.constant 0 : i32
    %c0_i32_0 = arith.constant 0 : i32
    return %c0_i32, %arg0 : i32, i32
  }
}

</mosaic_0001>

<bundles_post_ra>
// kernel: tpu_custom_call.1
= control target key start
LH: loop header
LB: loop body
LE: loop exit
PB: predicated region body
PF: predicated region fallthrough
CT: control target
= control target key end

     0   :  { %s679_s0 = inlined_call_operand.vmem [shape: bf16[32,8], index: 0, kind: input, shape index: {}]   ;;  %s680_s1 = inlined_call_operand.vmem [shape: bf16[32,8], index: 1, kind: input, shape index: {}]   ;;  %s681_s2 = inlined_call_operand.vmem [shape: f32[1,8], index: 2, kind: input, shape index: {}]   ;;  %s682_s3 = inlined_call_operand.vmem [shape: f32[64,96], index: 3, kind: input, shape index: {}]   ;;  %s683_s4 = inlined_call_operand.vmem [shape: f32[64,1], index: 4, kind: input, shape index: {}]   ;;  %s684_s5 = inlined_call_operand.vmem [shape: f32[64,1], index: 5, kind: input, shape index: {}]   ;;  %s685_s6 = inlined_call_operand.<no memory space> [shape: f32[1,1], index: 6, kind: input, shape index: {}]   ;;  %s686_s7 = inlined_call_operand.hbm [shape: f32[2,8], index: 7, kind: output, shape index: {}]  }
   0x1   :  { %v12_v0 = vstv %s685_s6 }
   0x2   :  { %13 = vst [vmem:[#allocation2] sm:$0x1] %v12_v0 }
   0x3   :  { %v374_v1 = vld [vmem:[%s679_s0] sm:$0xff]   ;;  %v389_v2 = vld [vmem:[%s679_s0 + $0x8] sm:$0xff]   ;;  %vm121_vm0 = vcmask 785408   ;;  %vm49_vm1 = vcmask 64512   ;;  %v511_v21 = vmov 0   ;;  %v75_v23 = vld [vmem:[%s683_s4 + $0x10] sm:$0xff] }
   0x4   :  { %v382_v3 = vld [vmem:[%s680_s1] sm:$0xff]   ;;  %448 = vmatprep.subr.bf16.mxu0 %v374_v1  ;;  %471 = vmatprep.subr.bf16.mxu1 %v374_v1  ;;  %v390_v4 = vld [vmem:[%s680_s1 + $0x8] sm:$0xff]   ;;  %v375_v5 = vunpack.c.l.bf16 %v374_v1  ;;  %v376_v6 = vunpack.c.h.bf16 %v374_v1  ;;  %v379_v11 = vunpack.c.l.bf16 %v389_v2  ;;  %v380_v12 = vunpack.c.h.bf16 %v389_v2  ;;  %v76_v29 = vld [vmem:[%s683_s4 + $0x18] sm:$0xff] }
   0x5   :  { %v383_v7 = vunpack.c.l.bf16 %v382_v3  ;;  %v384_v8 = vunpack.c.h.bf16 %v382_v3  ;;  %v65_v9 = vld [vmem:[%s682_s3] sm:$0xff]  ;;  %450 = vmatpush3.bf16.msra.mxu0 %v374_v1  ;;  %477 = vmatpush3.bf16.msra.mxu1 %v374_v1  ;;  %v387_v13 = vunpack.c.l.bf16 %v390_v4  ;;  %v388_v14 = vunpack.c.h.bf16 %v390_v4  ;;  %v74_v28 = vld [vmem:[%s683_s4 + $0x8] sm:$0xff] }
   0x6   :  { %v69_v10 = vld [vmem:[%s682_s3 + $0x20] sm:$0xff]  ;;  %452 = vmatprep.subr.bf16.mxu0 %v389_v2  ;;  %472 = vmatprep.subr.bf16.mxu1 %v389_v2 }
   0x7   :  { %v45_v15 = vmul.f32 %v383_v7, %v375_v5  ;;  %v46_v16 = vmul.f32 %v384_v8, %v376_v6  ;;  %v47_v17 = vmul.f32 %v387_v13, %v379_v11  ;;  %435 = vmatprep.mubr.msk.f32.mxu0 %vm121_vm0, %v65_v9  ;;  %441 = vmatprep.mubr.msk.f32.mxu1 %vm121_vm0, %v69_v10  ;;  %v73_v22 = vld [vmem:[%s683_s4] sm:$0xff] }
   0x8   :  { %v48_v20 = vmul.f32 %v388_v14, %v380_v12  ;;  %485 = vset.pattern.permute.xlu0 %v511_v21  ;;  %486 = vset.pattern.permute.xlu1 %v511_v21 }
   0x9   :  { %v50_v18 = vsel %vm49_vm1, %v45_v15, 0.0  ;;  %v51_v19 = vsel %vm49_vm1, %v46_v16, 0.0  ;;  %454 = vmatpush3.bf16.msra.mxu0 %v389_v2  ;;  %478 = vmatpush3.bf16.msra.mxu1 %v389_v2  ;;  %v53_v25 = vsel %vm49_vm1, %v47_v17, 0.0 }
   0xa   :  { %v52_v24 = vadd.f32 %v51_v19, %v50_v18  ;;  %456 = vmatprep.subr.bf16.mxu0 %v382_v3  ;;  %473 = vmatprep.subr.bf16.mxu1 %v382_v3  ;;  %v55_v26 = vsel %vm49_vm1, %v48_v20, 0.0 }
   0xb   :  { %83 = vperm.xlu0 %485, %v73_v22   ;;  %93 = vperm.xlu1 %486, %v75_v23  }
   0xc   :  { %v54_v27 = vadd.f32 %v53_v25, %v52_v24 }
   0xd   :  { %14 = vsyncpa [#allocation4], 0  ;;  %458 = vmatpush3.bf16.msra.mxu0 %v382_v3  ;;  %479 = vmatpush3.bf16.msra.mxu1 %v382_v3  ;;  %v463_v31 = vpack.c.bf16 %v46_v16, %v45_v15  ;;  %v259_v32 = vld [vmem:[%s684_s5] sm:$0xff]  ;;  %v260_v33 = vld [vmem:[%s684_s5 + $0x8] sm:$0xff]  ;;  %v467_v34 = vpack.c.bf16 %v48_v20, %v47_v17  ;;  %s512_s29 = smov [#allocation3]   ;;  %vm347_vm2 = vcmask 1040384  }
   0xe   :  { %v592_v30 = vadd.f32 %v55_v26, %v54_v27  ;;  %460 = vmatprep.subr.bf16.mxu0 %v390_v4  ;;  %474 = vmatprep.subr.bf16.mxu1 %v390_v4  ;;  %v77_v35 = vld [vmem:[%s683_s4 + $0x20] sm:$0xff]  ;;  %v261_v36 = vld [vmem:[%s684_s5 + $0x10] sm:$0xff]  ;;  %v78_v37 = vld [vmem:[%s683_s4 + $0x28] sm:$0xff]  ;;  %s357_s30 = sshll.u32 %s512_s29, 4  ;;  %vm349_vm3 = vcmask 58368   ;;  %s358_s30 = int_to_ptr.vmem [resolvable:$true] %s357_s30 }
   0xf   :  { %88 = vperm.xlu0 %485, %v74_v28   ;;  %98 = vperm.xlu1 %486, %v76_v29   ;;  %v262_v38 = vld [vmem:[%s684_s5 + $0x18] sm:$0xff]  ;;  %v66_v39 = vld [vmem:[%s682_s3 + $0x8] sm:$0xff]  ;;  %v67_v41 = vld [vmem:[%s682_s3 + $0x10] sm:$0xff]  ;;  %s487_s8 = scalar_lea.vmem %s358_s30, 32  ;;  %p492_p1 = scmp.lt.s32.totalorder %s358_s30, %s358_s30 }
  0x10   :  { %v70_v40 = vld [vmem:[%s682_s3 + $0x28] sm:$0xff]  ;;  %v71_v42 = vld [vmem:[%s682_s3 + $0x30] sm:$0xff]  ;;  %v263_v44 = vld [vmem:[%s684_s5 + $0x20] sm:$0xff]  ;;  %p488_p0 = scmp.ne.s32.totalorder %s358_s30, %s487_s8  ;;  %p493_p2 = scmp.lt.s32.totalorder %s487_s8, %s487_s8 }
  0x11   :  { %462 = vmatpush3.bf16.msra.mxu0 %v390_v4  ;;  %480 = vmatpush3.bf16.msra.mxu1 %v390_v4  ;;  %v79_v43 = vld [vmem:[%s683_s4 + $0x30] sm:$0xff]  ;;  %v68_v45 = vld [vmem:[%s682_s3 + $0x18] sm:$0xff]  ;;  %v264_v48 = vld [vmem:[%s684_s5 + $0x28] sm:$0xff] }
  0x12   :  { %464 = vmatprep.subr.bf16.mxu0 %v463_v31  ;;  %475 = vmatprep.subr.bf16.mxu1 %v463_v31  ;;  %v72_v46 = vld [vmem:[%s682_s3 + $0x38] sm:$0xff]  ;;  %v265_v49 = vld [vmem:[%s684_s5 + $0x30] sm:$0xff]  ;;  %v336_v51 = vld [vmem:[#allocation2] sm:$0x1]  ;;  %p494_p3 = por %p493_p2, %p492_p1 }
  0x13   :  { %269 = vperm.xlu0 %485, %v259_v32   ;;  %274 = vperm.xlu1 %486, %v260_v33   ;;  %v80_v47 = vld [vmem:[%s683_s4 + $0x38] sm:$0xff] }
  0x14   :  { %v266_v50 = vld [vmem:[%s684_s5 + $0x38] sm:$0xff]  ;;  %p495_p4 = pnand %p494_p3, %p488_p0 }
  0x15   :  { %466 = vmatpush3.bf16.msra.mxu0 %v463_v31  ;;  %481 = vmatpush3.bf16.msra.mxu1 %v463_v31  ;;  %v57_v31 = vrot.slane %v592_v30, 4 }
  0x16   :  { %468 = vmatprep.subr.bf16.mxu0 %v467_v34  ;;  %476 = vmatprep.subr.bf16.mxu1 %v467_v34 }
  0x17   :  { %103 = vperm.xlu0 %485, %v77_v35   ;;  %279 = vperm.xlu1 %486, %v261_v36  }
  0x19   :  { %470 = vmatpush3.bf16.msra.mxu0 %v467_v34  ;;  %482 = vmatpush3.bf16.msra.mxu1 %v467_v34 }
  0x1b   :  { %108 = vperm.xlu0 %485, %v78_v37   ;;  %284 = vperm.xlu1 %486, %v262_v38  }
  0x1c   :  { %436 = vmatmul.mubr.msk.f32.vlgmr.msra.gmra.mrb[0].mxu0 %vm121_vm0, %v66_v39  ;;  %442 = vmatmul.mubr.msk.f32.vlgmr.msra.gmra.mrb[0].mxu1 %vm121_vm0, %v70_v40 }
  0x1d   :  { %438 = vmatprep.mubr.msk.f32.mxu0 %vm121_vm0, %v67_v41  ;;  %444 = vmatprep.mubr.msk.f32.mxu1 %vm121_vm0, %v71_v42  ;;  %v58_v42 = vadd.f32 %v57_v31, %v592_v30 }
  0x1f   :  { %113 = vperm.xlu0 %485, %v79_v43   ;;  %289 = vperm.xlu1 %486, %v263_v44  }
  0x20   :  { %439 = vmatmul.mubr.msk.f32.gmra.mrb[2].mxu0 %vm121_vm0, %v68_v45  ;;  %445 = vmatmul.mubr.msk.f32.gmra.mrb[2].mxu1 %vm121_vm0, %v72_v46 }
  0x23   :  { %118 = vperm.xlu0 %485, %v80_v47   ;;  %294 = vperm.xlu1 %486, %v264_v48  }
  0x27   :  { %299 = vperm.xlu0 %485, %v265_v49   ;;  %304 = vperm.xlu1 %486, %v266_v50   ;;  %v59_v50 = vrot.slane %v58_v42, 2 }
  0x2b   :  { %339 = vperm.xlu0 %485, %v336_v51  }
  0x8a   :  { %v84_v52 = vpop.permute.xlu0 %83  ;;  %v94_v53 = vpop.permute.xlu1 %93 }
  0x8e   :  { %v89_v54 = vpop.permute.xlu0 %88  ;;  %v99_v55 = vpop.permute.xlu1 %98 }
  0x92   :  { %v270_v56 = vpop.permute.xlu0 %269  ;;  %v275_v57 = vpop.permute.xlu1 %274 }
  0x96   :  { %v104_v58 = vpop.permute.xlu0 %103  ;;  %v280_v59 = vpop.permute.xlu1 %279 }
  0x9a   :  { %v109_v60 = vpop.permute.xlu0 %108  ;;  %v285_v61 = vpop.permute.xlu1 %284 }
  0x9e   :  { %v114_v4 = vpop.permute.xlu0 %113  ;;  %v290_v5 = vpop.permute.xlu1 %289 }
  0xa2   :  { %v119_v24 = vpop.permute.xlu0 %118  ;;  %v295_v32 = vpop.permute.xlu1 %294 }
  0xa6   :  { %v300_v40 = vpop.permute.xlu0 %299  ;;  %v305_v45 = vpop.permute.xlu1 %304 }
  0xef   :  { %v437_v62 = vpop.f32.mrb[0].mxu0  ;;  %v443_v63 = vpop.f32.mrb[0].mxu1 }
  0xf0   :  { %v218_v0 = vadd.f32 %v437_v62, %v89_v54  ;;  %v212_v1 = vpop.f32.mrb[1].mxu0  ;;  %v232_v2 = vpop.f32.mrb[1].mxu1  ;;  %v238_v15 = vadd.f32 %v443_v63, %v109_v60  ;;  %v342_v54 = vlaneseq }
  0xf1   :  { %v213_v3 = vadd.f32 %v212_v1, %v84_v52  ;;  %v233_v8 = vadd.f32 %v232_v2, %v104_v58  ;;  %v63_v1 = vld [vmem:[%s681_s2] sm:$0x1] }
  0xf2   :  { %v252_v6 = vmax.f32 %v218_v0, 0.0  ;;  %v256_v26 = vmax.f32 %v238_v15, 0.0  ;;  %v343_v30 = vshrl.u32 %v342_v54, 7  ;;  %v340_v0 = vpop.permute.xlu0 %339 }
  0xf3   :  { %v251_v7 = vmax.f32 %v213_v3, 0.0  ;;  %v440_v9 = vpop.f32.mrb[2].mxu0  ;;  %v446_v10 = vpop.f32.mrb[2].mxu1  ;;  %v255_v21 = vmax.f32 %v233_v8, 0.0 }
  0xf4   :  { %v308_v11 = vmul.f32 %v275_v57, %v252_v6  ;;  %v228_v12 = vadd.f32 %v440_v9, %v99_v55  ;;  %v222_v13 = vpop.f32.mrb[3].mxu0  ;;  %v242_v14 = vpop.f32.mrb[3].mxu1  ;;  %v248_v28 = vadd.f32 %v446_v10, %v119_v24  ;;  %v312_v37 = vmul.f32 %v295_v32, %v256_v26 }
  0xf5   :  { %v307_v16 = vmul.f32 %v270_v56, %v251_v7  ;;  %v223_v17 = vadd.f32 %v222_v13, %v94_v53  ;;  %v243_v23 = vadd.f32 %v242_v14, %v114_v4  ;;  %v311_v33 = vmul.f32 %v290_v5, %v255_v21 }
  0xf6   :  { %v316_v18 = vsel %vm49_vm1, %v308_v11, 0.0  ;;  %v254_v19 = vmax.f32 %v228_v12, 0.0  ;;  %v258_v39 = vmax.f32 %v248_v28, 0.0  ;;  %v324_v47 = vsel %vm49_vm1, %v312_v37, 0.0 }
  0xf7   :  { %v315_v20 = vsel %vm49_vm1, %v307_v16, 0.0  ;;  %v253_v22 = vmax.f32 %v223_v17, 0.0  ;;  %v257_v35 = vmax.f32 %v243_v23, 0.0  ;;  %v322_v43 = vsel %vm49_vm1, %v311_v33, 0.0 }
  0xf8   :  { %v317_v25 = vadd.f32 %v316_v18, %v315_v20  ;;  %v310_v27 = vmul.f32 %v285_v61, %v254_v19  ;;  %v314_v48 = vmul.f32 %v305_v45, %v258_v39  ;;  %v60_v56 = vadd.f32 %v59_v50, %v58_v42 }
  0xf9   :  { %v309_v29 = vmul.f32 %v280_v59, %v253_v22  ;;  %v313_v44 = vmul.f32 %v300_v40, %v257_v35  ;;  %v344_v61 = vsub.s32 0, %v343_v30 }
  0xfa   :  { %v320_v38 = vsel %vm49_vm1, %v310_v27, 0.0  ;;  %v328_v53 = vsel %vm49_vm1, %v314_v48, 0.0  ;;  %v61_v59 = vrot.slane %v60_v56, 1 }
  0xfb   :  { %v318_v34 = vsel %vm49_vm1, %v309_v29, 0.0  ;;  %v326_v51 = vsel %vm49_vm1, %v313_v44, 0.0  ;;  %v345_v3 = vrot.slane %v340_v0, %v344_v61 }
  0xfc   :  { %v319_v36 = vadd.f32 %v318_v34, %v317_v25  ;;  %v62_v62 = vadd.f32 %v61_v59, %v60_v56 }
  0xfe   :  { %v321_v41 = vadd.f32 %v320_v38, %v319_v36  ;;  %v64_v4 = vadd.f32 %v63_v1, %v62_v62 }
 0x100   :  { %v323_v46 = vadd.f32 %v322_v43, %v321_v41 }
 0x102   :  { %v325_v49 = vadd.f32 %v324_v47, %v323_v46 }
 0x104   :  { %v327_v52 = vadd.f32 %v326_v51, %v325_v49 }
 0x106   :  { %v329_v55 = vadd.f32 %v328_v53, %v327_v52 }
 0x108   :  { %v330_v57 = vrot.slane %v329_v55, 4 }
 0x10a   :  { %v331_v58 = vadd.f32 %v330_v57, %v329_v55 }
 0x10c   :  { %v332_v60 = vrot.slane %v331_v58, 2 }
 0x10e   :  { %v333_v63 = vadd.f32 %v332_v60, %v331_v58 }
 0x110   :  { %v334_v2 = vrot.slane %v333_v63, 1 }
 0x112   :  { %v335_v5 = vadd.f32 %v334_v2, %v333_v63 }
 0x114   :  { %v346_v6 = vadd.f32 %v345_v3, %v335_v5 }
 0x116   :  { %v348_v7 = vsel %vm347_vm2, %v64_v4, %v346_v6 }
 0x117   :  { %350 = vst.msk [vmem:[#allocation3] sm:$0x3] %vm349_vm3, %v348_v7 }
 0x118   :  { %498 = shalt.err (!%p495_p4)
}
 0x119   :  { %s499_s10 = scalar_lea.hbm %s686_s7, 32 }
 0x11a   :  { %p500_p5 = scmp.ne.s32.totalorder %s686_s7, %s499_s10  ;;  %p503_p6 = scmp.lt.u32.totalorder %s499_s10, %s686_s7 }
 0x11c   :  { %p505_p7 = pnand %p503_p6, %p500_p5 }
 0x11e   :  { %508 = shalt.err (!%p505_p7)
}
 0x11f   :  { %360 = dma.vmem_to_hbm [thread:$0]  %s358_s30, 32, %s686_s7, [#allocation4]  }
 0x120   :  { %509 = dma.done.wait [#allocation4], 32  }
 0x121   :  { %510 = vsyncadd [#allocation4], 4294967264 }
 0x122   :  { %364 = vsyncpa [#allocation4], 1 }

</bundles_post_ra>
